<compile_context>
chip_gen: v7x
topology: tpu7x:2x2x1
jax: 0.10.0
libtpu: 0.0.40
codegen_flags: <defaults>
</compile_context>

<pallas_src>
import functools

import jax
import jax.numpy as jnp
from jax.experimental import pallas as pl
from jax.experimental.pallas import tpu as pltpu


def _round_up(x, m):
    return -(-x // m) * m


def _warp_kernel(img_ref, xy_ref, out_ref, *, Hp, W, Cp, compute_dtype):
    """One (batch n, output-pixel tile q) grid step of the separable bilinear warp."""
    tq = xy_ref.shape[2]

    # Sampling coordinates in input-pixel space (normalize -> grid_sample affine folded
    # into one affine in the wrapper).
    ix = xy_ref[0, 0:1, :]            # (1, Tq) f32, x (width) coordinate
    iy = xy_ref[0, 1:2, :]            # (1, Tq) f32, y (height) coordinate

    x0f = jnp.floor(ix)
    y0f = jnp.floor(iy)
    wx1 = ix - x0f
    wx0 = 1.0 - wx1
    wy1 = iy - y0f
    wy0 = 1.0 - wy1
    x0 = x0f.astype(jnp.int32)
    x1 = x0 + 1
    y0 = y0f.astype(jnp.int32)
    y1 = y0 + 1

    # ---- stage 1: x (width) interpolation on the MXU ------------------------------
    # One-hot x-weight slab (W, Tq).  Out-of-bounds corner indices never match an iota
    # row, which reproduces grid_sample's zeros padding with no extra masking.
    wcol = jax.lax.broadcasted_iota(jnp.int32, (W, tq), 0)
    xw = (jnp.where(wcol == x0, 1.0, 0.0) * wx0
          + jnp.where(wcol == x1, 1.0, 0.0) * wx1)              # (W, Tq) f32

    img = img_ref[0, :, :]                                      # (Cp*Hp, W) compute dtype
    tmp = jnp.dot(img, xw.astype(compute_dtype),
                  preferred_element_type=jnp.float32)           # (Cp*Hp, Tq) f32

    # ---- stage 2: y (height) blend: one-hot multiply + sublane reduce -------------
    hcol = jax.lax.broadcasted_iota(jnp.int32, (Hp, tq), 0)
    yw = (jnp.where(hcol == y0, 1.0, 0.0) * wy0
          + jnp.where(hcol == y1, 1.0, 0.0) * wy1)              # (Hp, Tq) f32

    # Hp is a multiple of 8, so splitting the (Cp*Hp) sublane axis is a clean regroup.
    out = jnp.sum(tmp.reshape(Cp, Hp, tq) * yw[None, :, :], axis=1)   # (Cp, Tq) f32
    out_ref[0, :, :] = out.astype(out_ref.dtype)


def _choose_tq(Hp, W, Cp, N, HW, *, budget_bytes, out_itemsize, cdt_itemsize):
    """Largest multiple-of-256 (floor 128) output tile whose live VMEM fits the budget."""
    # Tq-proportional bytes: xw (f32 + compute-dtype copy), yw (f32), stage-1 output and
    # its y-weighted product (f32), f32 result, double-buffered coord/output pipeline
    # blocks, small (1, Tq) coordinate vectors.
    per_tq = (W * (4 + cdt_itemsize)
              + Hp * 4
              + Cp * Hp * 8
              + Cp * (4 + 2 * out_itemsize)
              + 2 * 2 * 4
              + 64)
    fixed = 2 * Cp * Hp * W * cdt_itemsize          # double-buffered image block
    avail = budget_bytes - fixed
    cap = avail // per_tq if avail > 0 else 0
    tq = (cap // 256) * 256 if cap >= 256 else 128  # multiples of 256: full MXU columns
    # Don't over-pad past the problem size; keep >= 2 q-steps when N == 1 so both
    # TensorCores of a v7x chip get work.
    hw_cap = _round_up(HW, 128)
    if N == 1 and HW >= 256:
        hw_cap = _round_up(-(-HW // 2), 128)
    return int(max(128, min(tq, hw_cap)))


def deform_spatial_transform(img, flow, sample_grid, *, tq=None,
                             compute_dtype=jnp.bfloat16):
    """img: (N,C,H,W), flow: (N,2,H,W), sample_grid: (1,2,H,W).  Returns (N,C,H,W).

    Matches deform_SpatialTransform.forward: bilinear grid_sample, zeros padding,
    align_corners=False.  compute_dtype=bf16 feeds the MXU (default, ~1e-2 rel. error);
    pass jnp.float32 for tight parity with the PyTorch f32 module.
    """
    N, C, H, W = img.shape
    assert H > 1 and W > 1, "H and W must be > 1 (module divides by H-1 and W-1)"
    HW = H * W
    out_dtype = img.dtype
    cdt_size = jnp.dtype(compute_dtype).itemsize
    out_size = jnp.dtype(out_dtype).itemsize

    # Fold  normalize -> grid_sample un-normalize (align_corners=False)  into one affine:
    #   ix = W/(W-1) * (gx + fx) - 0.5 ,   iy = H/(H-1) * (gy + fy) - 0.5
    scale = jnp.array([W / (W - 1.0), H / (H - 1.0)],
                      dtype=jnp.float32).reshape(1, 2, 1, 1)
    coords = scale * (sample_grid.astype(jnp.float32) + flow.astype(jnp.float32)) - 0.5
    coords = coords.reshape(N, 2, HW)

    # Pad channels and rows to full sublanes and pre-cast to the MXU compute dtype
    # (padded rows/channels are zero, so they never contribute).
    Cp = _round_up(C, 8)
    Hp = _round_up(H, 8)
    img_p = img.astype(compute_dtype)
    if Cp != C or Hp != H:
        img_p = jnp.pad(img_p, ((0, 0), (0, Cp - C), (0, Hp - H), (0, 0)))
    img_rs = img_p.reshape(N, Cp * Hp, W)

    # VMEM-aware tile choice + scoped-VMEM limit scaled to the chip's capacity.
    try:
        vmem_cap = int(pltpu.get_tpu_info().vmem_capacity_bytes)
    except Exception:
        vmem_cap = 64 * 1024 * 1024                 # v7x-safe assumption
    vmem_limit = int(min(100 * 1024 * 1024, (vmem_cap * 3) // 4))
    budget = (vmem_limit * 3) // 5

    if tq is None:
        tq = _choose_tq(Hp, W, Cp, N, HW, budget_bytes=budget,
                        out_itemsize=out_size, cdt_itemsize=cdt_size)
    assert tq % 128 == 0, f"output tile {tq} must be a multiple of 128"

    nq = -(-HW // tq)
    HWp = nq * tq
    if HWp != HW:
        coords = jnp.pad(coords, ((0, 0), (0, 0), (0, HWp - HW)))

    kernel = functools.partial(_warp_kernel, Hp=Hp, W=W, Cp=Cp,
                               compute_dtype=compute_dtype)
    cost = pl.CostEstimate(
        flops=2 * N * nq * (Cp * Hp) * W * tq + 2 * N * nq * Cp * Hp * tq,
        transcendentals=0,
        bytes_accessed=(N * Cp * Hp * W * cdt_size + N * 2 * HWp * 4
                        + N * Cp * HWp * out_size),
    )

    out = pl.pallas_call(
        kernel,
        out_shape=jax.ShapeDtypeStruct((N, Cp, HWp), out_dtype),
        grid_spec=pltpu.PrefetchScalarGridSpec(
            num_scalar_prefetch=0,
            grid=(N, nq),
            in_specs=[
                # Full (reshaped, pre-cast) gather source per batch element; its block
                # index only changes with n, so it is not re-DMA'd across q tiles.
                pl.BlockSpec((1, Cp * Hp, W), lambda n, q: (n, 0, 0)),
                # Pre-folded sampling coordinates, tiled along the output-pixel axis.
                pl.BlockSpec((1, 2, tq), lambda n, q: (n, 0, q)),
            ],
            out_specs=pl.BlockSpec((1, Cp, tq), lambda n, q: (n, 0, q)),
        ),
        compiler_params=pltpu.CompilerParams(
            dimension_semantics=("parallel", "parallel"),
            vmem_limit_bytes=vmem_limit,
        ),
        cost_estimate=cost,
    )(img_rs, coords)

    return out[:, :C, :HW].reshape(N, C, H, W)


def _reference(img, flow, sample_grid):
    """Pure-JAX reference mirroring the PyTorch forward (grid_sample bilinear,
    zeros padding, align_corners=False)."""
    N, C, H, W = img.shape
    flow_p = jnp.transpose(flow, (0, 2, 3, 1))                       # (N,H,W,2)
    grid_p = jnp.transpose(jnp.tile(sample_grid, (N, 1, 1, 1)), (0, 2, 3, 1))
    g = grid_p + flow_p
    nx = (g[..., 0] - (W - 1) / 2.0) / (W - 1.0) * 2.0
    ny = (g[..., 1] - (H - 1) / 2.0) / (H - 1.0) * 2.0
    ix = ((nx + 1.0) * W - 1.0) * 0.5
    iy = ((ny + 1.0) * H - 1.0) * 0.5
    x0 = jnp.floor(ix); x1 = x0 + 1.0
    y0 = jnp.floor(iy); y1 = y0 + 1.0
    wx1 = ix - x0; wx0 = 1.0 - wx1
    wy1 = iy - y0; wy0 = 1.0 - wy1

    n_idx = jnp.arange(N)[:, None, None, None]
    c_idx = jnp.arange(C)[None, :, None, None]

    def gather(xi, yi, w):
        inb = (xi >= 0) & (xi < W) & (yi >= 0) & (yi < H)
        xc = jnp.clip(xi, 0, W - 1).astype(jnp.int32)
        yc = jnp.clip(yi, 0, H - 1).astype(jnp.int32)
        val = img[n_idx, c_idx, yc[:, None, :, :], xc[:, None, :, :]]
        return val * (w * inb)[:, None, :, :]

    return (gather(x0, y0, wx0 * wy0) + gather(x1, y0, wx1 * wy0)
            + gather(x0, y1, wx0 * wy1) + gather(x1, y1, wx1 * wy1))


if __name__ == "__main__":
    key = jax.random.PRNGKey(0)
    N, C, H, W = 2, 4, 16, 16
    k1, k2 = jax.random.split(key)
    img = jax.random.normal(k1, (N, C, H, W), dtype=jnp.float32)
    flow = 2.0 * jax.random.normal(k2, (N, 2, H, W), dtype=jnp.float32)

    # identity sampling grid in pixel coordinates: channel 0 = x, channel 1 = y
    xs = jnp.arange(W, dtype=jnp.float32)
    ys = jnp.arange(H, dtype=jnp.float32)
    grid_x = jnp.tile(xs[None, :], (H, 1))
    grid_y = jnp.tile(ys[:, None], (1, W))
    sample_grid = jnp.stack([grid_x, grid_y], axis=0)[None]  # (1, 2, H, W)

    ref = _reference(img, flow, sample_grid)

    # f32 MXU path with tq=128 (2 output tiles per batch element) — tight check of the
    # separable one-hot construction and the q-tiled grid.
    out_f32 = deform_spatial_transform(img, flow, sample_grid, tq=128,
                                       compute_dtype=jnp.float32)
    out_f32 = jax.block_until_ready(out_f32)
    assert out_f32.shape == (N, C, H, W)
    err_f32 = float(jnp.max(jnp.abs(out_f32 - ref)))
    assert err_f32 < 1e-4, f"f32 path mismatch vs reference: {err_f32}"

    # Default bf16 MXU path with automatic tile choice (the performance configuration).
    out_bf16 = deform_spatial_transform(img, flow, sample_grid)
    out_bf16 = jax.block_until_ready(out_bf16)
    assert out_bf16.shape == (N, C, H, W)
    err_bf16 = float(jnp.max(jnp.abs(out_bf16 - ref)))
    assert err_bf16 < 5e-2, f"bf16 path mismatch vs reference: {err_bf16}"

    print("KERNEL_OK")
</pallas_src>

<mosaic_0001>
module attributes {stable_mosaic.version = 11 : i64} {
  func.func @_warp_kernel(%arg0: i32, %arg1: i32, %arg2: memref<1x128x16xf32, #tpu.memory_space<vmem>>, %arg3: memref<1x2x128xf32, #tpu.memory_space<vmem>>, %arg4: memref<1x8x128xf32, #tpu.memory_space<vmem>>) attributes {dimension_semantics = [#tpu.dimension_semantics<parallel>, #tpu.dimension_semantics<parallel>], iteration_bounds = array<i64: 2, 2>, scalar_prefetch = 0 : i64, scratch_operands = 0 : i64, tpu.core_type = #tpu.core_type<tc>, window_params = [{transform_indices = @transform_0, window_bounds = array<i64: 1, 128, 16>}, {transform_indices = @transform_1, window_bounds = array<i64: 1, 2, 128>}, {transform_indices = @transform_2, window_bounds = array<i64: 1, 8, 128>}]} {
    %c0 = arith.constant 0 : index
    %c0_0 = arith.constant 0 : index
    %c0_1 = arith.constant 0 : index
    %0 = vector.load %arg3[%c0, %c0_0, %c0_1] : memref<1x2x128xf32, #tpu.memory_space<vmem>>, vector<1x1x128xf32>
    %1 = vector.shape_cast %0 : vector<1x1x128xf32> to vector<1x128xf32>
    %c0_2 = arith.constant 0 : index
    %c1 = arith.constant 1 : index
    %c0_3 = arith.constant 0 : index
    %2 = vector.load %arg3[%c0_2, %c1, %c0_3] : memref<1x2x128xf32, #tpu.memory_space<vmem>>, vector<1x1x128xf32>
    %3 = vector.shape_cast %2 : vector<1x1x128xf32> to vector<1x128xf32>
    %4 = math.floor %1 : vector<1x128xf32>
    %5 = math.floor %3 : vector<1x128xf32>
    %6 = arith.subf %1, %4 : vector<1x128xf32>
    %cst = arith.constant 1.000000e+00 : f32
    %7 = vector.broadcast %cst : f32 to vector<1x128xf32>
    %8 = arith.subf %7, %6 : vector<1x128xf32>
    %9 = arith.subf %3, %5 : vector<1x128xf32>
    %cst_4 = arith.constant 1.000000e+00 : f32
    %10 = vector.broadcast %cst_4 : f32 to vector<1x128xf32>
    %11 = arith.subf %10, %9 : vector<1x128xf32>
    %12 = arith.fptosi %4 : vector<1x128xf32> to vector<1x128xi32>
    %c1_i32 = arith.constant 1 : i32
    %13 = vector.broadcast %c1_i32 : i32 to vector<1x128xi32>
    %14 = arith.addi %12, %13 : vector<1x128xi32>
    %15 = arith.fptosi %5 : vector<1x128xf32> to vector<1x128xi32>
    %c1_i32_5 = arith.constant 1 : i32
    %16 = vector.broadcast %c1_i32_5 : i32 to vector<1x128xi32>
    %17 = arith.addi %15, %16 : vector<1x128xi32>
    %18 = tpu.iota {dimensions = array<i32: 0>} : vector<16x128xi32>
    %19 = vector.broadcast %12 : vector<1x128xi32> to vector<16x128xi32>
    %20 = arith.cmpi eq, %18, %19 : vector<16x128xi32>
    %cst_6 = arith.constant 1.000000e+00 : f32
    %cst_7 = arith.constant 0.000000e+00 : f32
    %21 = vector.broadcast %cst_6 : f32 to vector<16x128xf32>
    %22 = vector.broadcast %cst_7 : f32 to vector<16x128xf32>
    %23 = arith.select %20, %21, %22 : vector<16x128xi1>, vector<16x128xf32>
    %24 = vector.broadcast %8 : vector<1x128xf32> to vector<16x128xf32>
    %25 = arith.mulf %23, %24 : vector<16x128xf32>
    %26 = vector.broadcast %14 : vector<1x128xi32> to vector<16x128xi32>
    %27 = arith.cmpi eq, %18, %26 : vector<16x128xi32>
    %cst_8 = arith.constant 1.000000e+00 : f32
    %cst_9 = arith.constant 0.000000e+00 : f32
    %28 = vector.broadcast %cst_8 : f32 to vector<16x128xf32>
    %29 = vector.broadcast %cst_9 : f32 to vector<16x128xf32>
    %30 = arith.select %27, %28, %29 : vector<16x128xi1>, vector<16x128xf32>
    %31 = vector.broadcast %6 : vector<1x128xf32> to vector<16x128xf32>
    %32 = arith.mulf %30, %31 : vector<16x128xf32>
    %33 = arith.addf %25, %32 : vector<16x128xf32>
    %c0_10 = arith.constant 0 : index
    %c0_11 = arith.constant 0 : index
    %c0_12 = arith.constant 0 : index
    %34 = vector.load %arg2[%c0_10, %c0_11, %c0_12] : memref<1x128x16xf32, #tpu.memory_space<vmem>>, vector<1x128x16xf32>
    %35 = vector.shape_cast %34 : vector<1x128x16xf32> to vector<128x16xf32>
    %cst_13 = arith.constant dense<0.000000e+00> : vector<128x128xf32>
    %36 = tpu.matmul %35, %33, %cst_13 {dimension_numbers = #tpu.dot_dimension_numbers<[1], [0], [0], [1], [0, 0, 1, 1], [], []>} : vector<128x16xf32>, vector<16x128xf32>, vector<128x128xf32> -> vector<128x128xf32>
    %37 = tpu.iota {dimensions = array<i32: 0>} : vector<16x128xi32>
    %38 = vector.broadcast %15 : vector<1x128xi32> to vector<16x128xi32>
    %39 = arith.cmpi eq, %37, %38 : vector<16x128xi32>
    %cst_14 = arith.constant 1.000000e+00 : f32
    %cst_15 = arith.constant 0.000000e+00 : f32
    %40 = vector.broadcast %cst_14 : f32 to vector<16x128xf32>
    %41 = vector.broadcast %cst_15 : f32 to vector<16x128xf32>
    %42 = arith.select %39, %40, %41 : vector<16x128xi1>, vector<16x128xf32>
    %43 = vector.broadcast %11 : vector<1x128xf32> to vector<16x128xf32>
    %44 = arith.mulf %42, %43 : vector<16x128xf32>
    %45 = vector.broadcast %17 : vector<1x128xi32> to vector<16x128xi32>
    %46 = arith.cmpi eq, %37, %45 : vector<16x128xi32>
    %cst_16 = arith.constant 1.000000e+00 : f32
    %cst_17 = arith.constant 0.000000e+00 : f32
    %47 = vector.broadcast %cst_16 : f32 to vector<16x128xf32>
    %48 = vector.broadcast %cst_17 : f32 to vector<16x128xf32>
    %49 = arith.select %46, %47, %48 : vector<16x128xi1>, vector<16x128xf32>
    %50 = vector.broadcast %9 : vector<1x128xf32> to vector<16x128xf32>
    %51 = arith.mulf %49, %50 : vector<16x128xf32>
    %52 = arith.addf %44, %51 : vector<16x128xf32>
    %53 = vector.shape_cast %36 : vector<128x128xf32> to vector<8x16x128xf32>
    %54 = vector.shape_cast %52 : vector<16x128xf32> to vector<1x16x128xf32>
    %55 = vector.broadcast %54 : vector<1x16x128xf32> to vector<8x16x128xf32>
    %56 = arith.mulf %53, %55 : vector<8x16x128xf32>
    %cst_18 = arith.constant dense<0.000000e+00> : vector<8x128xf32>
    %57 = vector.multi_reduction <add>, %56, %cst_18 [1] : vector<8x16x128xf32> to vector<8x128xf32>
    %c0_19 = arith.constant 0 : index
    %c0_20 = arith.constant 0 : index
    %c0_21 = arith.constant 0 : index
    %58 = vector.load %arg4[%c0_19, %c0_20, %c0_21] : memref<1x8x128xf32, #tpu.memory_space<vmem>>, vector<1x8x128xf32>
    %59 = vector.shape_cast %58 : vector<1x8x128xf32> to vector<8x128xf32>
    %60 = vector.shape_cast %57 : vector<8x128xf32> to vector<1x8x128xf32>
    tpu.vector_store %arg4[%c0_19, %c0_20, %c0_21], %60 {strides = array<i32>} : memref<1x8x128xf32, #tpu.memory_space<vmem>>, vector<1x8x128xf32>,
    return
  }
  func.func @transform_0(%arg0: i32, %arg1: i32) -> (i32, i32, i32) {
    %c0_i32 = arith.constant 0 : i32
    %c0_i32_0 = arith.constant 0 : i32
    %c0_i32_1 = arith.constant 0 : i32
    return %arg0, %c0_i32, %c0_i32_0 : i32, i32, i32
  }
  func.func @transform_1(%arg0: i32, %arg1: i32) -> (i32, i32, i32) {
    %c0_i32 = arith.constant 0 : i32
    %c0_i32_0 = arith.constant 0 : i32
    return %arg0, %c0_i32, %arg1 : i32, i32, i32
  }
  func.func @transform_2(%arg0: i32, %arg1: i32) -> (i32, i32, i32) {
    %c0_i32 = arith.constant 0 : i32
    %c0_i32_0 = arith.constant 0 : i32
    return %arg0, %c0_i32, %arg1 : i32, i32, i32
  }
}

</mosaic_0001>

<bundles_post_ra>
// kernel: tpu_custom_call.1
= control target key start
LH: loop header
LB: loop body
LE: loop exit
PB: predicated region body
PF: predicated region fallthrough
CT: control target
= control target key end

     0   :  { %7 = vsyncpa [#allocation3], 0  ;;  %s1148_s0 = inlined_call_operand.vmem [shape: f32[2,128,16], index: 0, kind: input, shape index: {}]   ;;  %s1149_s1 = inlined_call_operand.vmem [shape: f32[2,2,256], index: 1, kind: input, shape index: {}]   ;;  %s1150_s2 = inlined_call_operand.hbm [shape: f32[2,8,256], index: 2, kind: output, shape index: {}]  }
   0x1   :  { %9 = vsyncpa [#allocation3 + $0x1], 0  ;;  %s947_s9 = smov 0   ;;  %s949_s10 = smov 0  }
   0x2   :  { %s951_s11 = smov 0   ;;  %s953_s12 = smov 0  }
   0x3   :  { %s955_s13 = smov 0   ;;  %s957_s14 = smov 0  }
   0x4   :  { %s959_s15 = smov 0   ;;  %s961_s16 = smov 0  }
   0x5 LB: > { %s674_s17 = sadd.s32 4294967295, %s928_s16   ;;  %s675_s18 = sadd.s32 4294967294, %s928_s16   ;;  %s928_s16 = sphi %s961_s16, %s15_s16   ;;  %s924_s15 = sphi %s959_s15, %s1159_s15   ;;  %s920_s14 = sphi %s957_s14, %s1158_s14   ;;  %s916_s13 = sphi %s955_s13, %s1157_s13   ;;  %s912_s12 = sphi %s953_s12, %s1156_s12   ;;  %s908_s11 = sphi %s951_s11, %s1155_s11   ;;  %s904_s10 = sphi %s949_s10, %s1154_s10   ;;  %s900_s9 = sphi %s947_s9, %s1153_s9  }
   0x6   : > { %s24_s19 = sadd.s32 1, %s920_s14  ;;  %s27_s20 = sadd.s32 1, %s924_s15 }
   0x7   : > { %p25_p0 = scmp.ge.s32.totalorder %s24_s19, 2  ;;  %p100_p1 = scmp.ne.s32.totalorder %s908_s11, %s904_s10 }
   0x8   : > { %p101_p2 = scmp.eq.s32.totalorder %s674_s17, 3  ;;  %p106_p5 = scmp.ne.s32.totalorder %s904_s10, %s900_s9 }
   0x9   : > { %s1161_s19 = smov (%p25_p0, %s24_s19), 0  ;;  %s1163_s20 = smov (!%p25_p0, %s27_s20), %s924_s15 }
   0xa   : > { %s86_s21 = ssub.s32 %s920_s14, %s1161_s19  ;;  %p998_p3 = por %p101_p2, %p100_p1 }
   0xb   : > { %p29_p4 = scmp.ge.s32.totalorder %s1163_s20, 2  ;;  %p107_p6 = scmp.eq.s32.totalorder %s675_s18, 3 }
   0xc   : > { %p678_p7 = scmp.ge.s32.totalorder %s928_s16, 1  ;;  %p144_p9 = scmp.lt.s32.totalorder %s928_s16, 5 }
   0xd   : > { %s1165_s20 = smov (%p29_p4, %s1163_s20), 0  ;;  %p1007_p8 = por %p107_p6, %p106_p5 }
   0xe   : > { %s85_s24 = ssub.s32 %s924_s15, %s1165_s20  ;;  %s90_s25 = sadd.s32 1, %s908_s11 }
   0xf   : > { %s87_s26 = sor.u32 %s86_s21, %s85_s24  ;;  %p145_p10 = pnand %p678_p7, %p144_p9 }
  0x10   : > { %p88_p11 = scmp.eq.s32.totalorder %s87_s26, 0  ;;  %p174_p12 = scmp.lt.s32.totalorder (!%p145_p10), %s916_s13, 1  ;;  %v199_v0 = vlaneseq (!%p145_p10)  ;;  %vm248_vm0 = vcmask (!%p145_p10), 130048   ;;  %v930_v28 = vmov (!%p145_p10), 0.0   ;;  %vm552_vm9 = vcmask (!%p145_p10), 1041409  }
  0x11   : > { %148 = sbr.rel (%p145_p10) target bundleno = 313 (0x139), region = 28  ;;  %p181_p13 = scmp.lt.s32.totalorder (!%p145_p10), %s912_s12, 1  ;;  %vm554_vm10 = vcmask (!%p145_p10), 1042434   ;;  %vm556_vm11 = vcmask (!%p145_p10), 1043459   ;;  %vm558_vm12 = vcmask (!%p145_p10), 1044484   ;;  %vm560_vm13 = vcmask (!%p145_p10), 1045509  }
  0x12   : > { %s1016_s27 = scalar_select %p88_p11, %s908_s11, %s90_s25  }
  0x13   : > { %v200_v1 = vshrl.u32 (!%p145_p10), %v199_v0, 7  ;;  %s171_s24 = sand.u32 (!%p145_p10), 1, %s904_s10   ;;  %s701_s26 = sshll.u32 (!%p145_p10), %s916_s13, 1  ;;  %vm562_vm14 = vcmask (!%p145_p10), 1046534   ;;  %vm564_vm15 = vcmask (!%p145_p10), 1047559  }
  0x14   : > { %s1085_s25 = sshll.u32 (!%p145_p10), %s171_s24, 3  ;;  %s569_s5 = scalar_lea.sflag (!%p145_p10), [#allocation3], %s171_s24 }
  0x15   : > { %v204_v8 = vsub.s32 (!%p145_p10), 0, %v200_v1  ;;  %v201_v13 = vadd.s32 (!%p145_p10), 8, %v200_v1 }
  0x18   : > { %s175_s28 = scalar_select %p174_p12, %s916_s13, 1 }
  0x19   : > { %s182_s29 = scalar_select %p181_p13, %s912_s12, 1 }
  0x1a   : > { %s705_s30 = sshll.u32 %s175_s28, 7  ;;  %s682_s3 = sshll.u32 %s175_s28, 1 }
  0x1b   : > { %s1025_s6 = scalar_lea.vmem %s1148_s0, %s705_s30  ;;  %s184_s7 = sadd.s32 %s682_s3, %s182_s29 }
  0x1c   : > { %s683_s8 = sshll.u32 %s184_s7, 1  ;;  %v232_v2 = vld [vmem:[%s1025_s6] sm:$0xff]  ;;  %v233_v50 = vld [vmem:[%s1025_s6 + $0x8] sm:$0xff]  ;;  %v234_v52 = vld [vmem:[%s1025_s6 + $0x10] sm:$0xff]  ;;  %s580_s28 = sadd.s32 %s912_s12, %s701_s26 }
  0x1d   : > { %v240_v3 = vld [vmem:[%s1025_s6 + $0x40] sm:$0xff]  ;;  %s186_s21 = scalar_lea.vmem %s1149_s1, %s683_s8  ;;  %728 = vmatprep.mubr.msk.f32.mxu0 %vm248_vm0, %v232_v2  ;;  %v241_v51 = vld [vmem:[%s1025_s6 + $0x48] sm:$0xff]  ;;  %v242_v53 = vld [vmem:[%s1025_s6 + $0x50] sm:$0xff]  ;;  %s702_s29 = sshll.u32 %s580_s28, 7 }
  0x1e   : > { %740 = vmatprep.mubr.msk.f32.mxu1 %vm248_vm0, %v240_v3  ;;  %v187_v4 = vld [vmem:[%s186_s21] sm:$0x1]  ;;  %v188_v5 = vld [vmem:[%s186_s21 + $0x1] sm:$0x1]  ;;  %v235_v54 = vld [vmem:[%s1025_s6 + $0x18] sm:$0xff]  ;;  %s173_s13 = scalar_lea.vmem [#allocation2], %s1085_s25  ;;  %s1093_s4 = scalar_lea.hbm %s1150_s2, %s702_s29 }
  0x1f   : > { %v189_v6 = vfloor.f32 %v187_v4  ;;  %v190_v7 = vfloor.f32 %v188_v5  ;;  %v243_v55 = vld [vmem:[%s1025_s6 + $0x58] sm:$0xff]  ;;  %v236_v56 = vld [vmem:[%s1025_s6 + $0x20] sm:$0xff]  ;;  %v237_v58 = vld [vmem:[%s1025_s6 + $0x28] sm:$0xff]  ;;  %s584_s30 = sshll.u32 %s173_s13, 4  ;;  %s931_s7 = smov [#allocation2]   ;;  %s1095_s30 = int_to_ptr.vmem [resolvable:$true] %s584_s30 }
  0x20   : > { %v244_v57 = vld [vmem:[%s1025_s6 + $0x60] sm:$0xff]  ;;  %v245_v59 = vld [vmem:[%s1025_s6 + $0x68] sm:$0xff]  ;;  %v238_v60 = vld [vmem:[%s1025_s6 + $0x30] sm:$0xff]  ;;  %s838_s8 = sshll.u32 %s931_s7, 4  ;;  %s839_s8 = int_to_ptr.vmem [resolvable:$false] %s838_s8 }
  0x21   : > { %v191_v9 = vsub.f32 %v187_v4, %v189_v6  ;;  %v193_v10 = vsub.f32 %v188_v5, %v190_v7  ;;  %v758_v11 = vtrunc.f32 %v189_v6  ;;  %v760_v12 = vtrunc.f32 %v190_v7  ;;  %v246_v61 = vld [vmem:[%s1025_s6 + $0x70] sm:$0xff]  ;;  %v239_v62 = vld [vmem:[%s1025_s6 + $0x38] sm:$0xff]  ;;  %s840_s17 = scalar_lea.vmem %s839_s8, 256  ;;  %p841_p4 = scmp.lt.s32.totalorder %s1095_s30, %s839_s8 }
  0x22   : > { %v247_v63 = vld [vmem:[%s1025_s6 + $0x78] sm:$0xff]  ;;  %s834_s6 = scalar_lea.vmem %s1095_s30, 128 }
  0x23   : > { %v192_v14 = vsub.f32 1.0, %v191_v9  ;;  %v194_v15 = vsub.f32 1.0, %v193_v10  ;;  %v759_v16 = vcvt.f32.s32 %v758_v11  ;;  %v761_v17 = vcvt.f32.s32 %v760_v12  ;;  %p835_p0 = scmp.ne.s32.totalorder %s1095_s30, %s834_s6  ;;  %p842_p5 = scmp.lt.s32.totalorder %s840_s17, %s834_s6 }
  0x24   : > { %v467_v18 = vrot.slane %v193_v10, %v204_v8  ;;  %v227_v23 = vrot.slane %v191_v9, %v204_v8 }
  0x25   : > { %v196_v19 = vadd.s32 1, %v759_v16  ;;  %v198_v20 = vadd.s32 1, %v761_v17  ;;  %v205_v21 = vrot.slane %v759_v16, %v204_v8  ;;  %v213_v22 = vrot.slane %v192_v14, %v204_v8  ;;  %p836_p1 = pnand %p835_p0, %p998_p3  ;;  %p843_p6 = por %p842_p5, %p841_p4 }
  0x26   : > { %v445_v24 = vrot.slane %v761_v17, %v204_v8  ;;  %v453_v25 = vrot.slane %v194_v15, %v204_v8 }
  0x27   : > { %vm206_vm1 = vcmp.eq.s32.totalorder %v200_v1, %v205_v21  ;;  %vm207_vm2 = vcmp.eq.s32.totalorder %v201_v13, %v205_v21  ;;  %v219_v26 = vrot.slane %v196_v19, %v204_v8  ;;  %v459_v27 = vrot.slane %v198_v20, %v204_v8  ;;  %p837_p2 = pneg %p836_p1 }
  0x28   : > { %v208_v29 = vsel %vm206_vm1, 1.0, %v930_v28  ;;  %v209_v30 = vsel %vm207_vm2, 1.0, %v930_v28  ;;  %vm446_vm3 = vcmp.eq.s32.totalorder %v200_v1, %v445_v24  ;;  %vm447_vm4 = vcmp.eq.s32.totalorder %v201_v13, %v445_v24 }
  0x29   : > { %v214_v31 = vmul.f32 %v213_v22, %v208_v29  ;;  %v215_v32 = vmul.f32 %v213_v22, %v209_v30  ;;  %vm220_vm5 = vcmp.eq.s32.totalorder %v200_v1, %v219_v26  ;;  %vm221_vm6 = vcmp.eq.s32.totalorder %v201_v13, %v219_v26  ;;  %p844_p7 = pnand %p843_p6, %p837_p2 }
  0x2a   : > { %v222_v33 = vsel %vm220_vm5, 1.0, %v930_v28  ;;  %v223_v34 = vsel %vm221_vm6, 1.0, %v930_v28  ;;  %v448_v35 = vsel %vm446_vm3, 1.0, %v930_v28  ;;  %v449_v36 = vsel %vm447_vm4, 1.0, %v930_v28 }
  0x2b   : > { %v228_v37 = vmul.f32 %v227_v23, %v222_v33  ;;  %v229_v38 = vmul.f32 %v227_v23, %v223_v34  ;;  %v454_v39 = vmul.f32 %v453_v25, %v448_v35  ;;  %v455_v40 = vmul.f32 %v453_v25, %v449_v36 }
  0x2c   : > { %vm460_vm7 = vcmp.eq.s32.totalorder %v200_v1, %v459_v27  ;;  %vm461_vm8 = vcmp.eq.s32.totalorder %v201_v13, %v459_v27 }
  0x2d   : > { %v230_v41 = vadd.f32 %v228_v37, %v214_v31  ;;  %v231_v42 = vadd.f32 %v229_v38, %v215_v32  ;;  %v462_v43 = vsel %vm460_vm7, 1.0, %v930_v28  ;;  %v463_v44 = vsel %vm461_vm8, 1.0, %v930_v28 }
  0x2e   : > { %v468_v45 = vmul.f32 %v467_v18, %v462_v43  ;;  %v469_v46 = vmul.f32 %v467_v18, %v463_v44 }
  0x2f   : > { %v752_v47 = vpack.c.bf16 %v231_v42, %v230_v41 }
  0x30   : > { %v1034_v48 = vadd.f32 %v468_v45, %v454_v39  ;;  %v1036_v49 = vadd.f32 %v469_v46, %v455_v40 }
  0x31   : > { %753 = vmatprep.subr.bf16.mxu0 %v752_v47  ;;  %756 = vmatprep.subr.bf16.mxu1 %v752_v47 }
  0x32   : > { %755 = vmatpush3.bf16.msra.mxu0 %v752_v47  ;;  %757 = vmatpush3.bf16.msra.mxu1 %v752_v47 }
  0x35   : > { %729 = vmatmul.mubr.msk.f32.vlgmr.msra.gmra.mrb[0].mxu0 %vm248_vm0, %v233_v50  ;;  %741 = vmatmul.mubr.msk.f32.vlgmr.msra.gmra.mrb[0].mxu1 %vm248_vm0, %v241_v51 }
  0x36   : > { %731 = vmatprep.mubr.msk.f32.mxu0 %vm248_vm0, %v234_v52  ;;  %743 = vmatprep.mubr.msk.f32.mxu1 %vm248_vm0, %v242_v53 }
  0x39   : > { %732 = vmatmul.mubr.msk.f32.gmra.mrb[2].mxu0 %vm248_vm0, %v235_v54  ;;  %744 = vmatmul.mubr.msk.f32.gmra.mrb[2].mxu1 %vm248_vm0, %v243_v55 }
  0x3a   : > { %734 = vmatprep.mubr.msk.f32.mxu0 %vm248_vm0, %v236_v56  ;;  %746 = vmatprep.mubr.msk.f32.mxu1 %vm248_vm0, %v244_v57 }
  0x3d   : > { %735 = vmatmul.mubr.msk.f32.gmra.mrb[4].mxu0 %vm248_vm0, %v237_v58  ;;  %747 = vmatmul.mubr.msk.f32.gmra.mrb[4].mxu1 %vm248_vm0, %v245_v59 }
  0x3e   : > { %737 = vmatprep.mubr.msk.f32.mxu0 %vm248_vm0, %v238_v60  ;;  %749 = vmatprep.mubr.msk.f32.mxu1 %vm248_vm0, %v246_v61 }
  0x41   : > { %738 = vmatmul.mubr.msk.f32.gmra.mrb[6].mxu0 %vm248_vm0, %v239_v62  ;;  %750 = vmatmul.mubr.msk.f32.gmra.mrb[6].mxu1 %vm248_vm0, %v247_v63 }
 0x108   : > { %v730_v0 = vpop.f32.mrb[0].mxu0  ;;  %v742_v1 = vpop.f32.mrb[0].mxu1 }
 0x109   : > { %v473_v2 = vmul.f32 %v730_v0, %v1036_v49  ;;  %v481_v3 = vmul.f32 %v742_v1, %v1036_v49  ;;  %v363_v4 = vpop.f32.mrb[1].mxu0  ;;  %v403_v5 = vpop.f32.mrb[1].mxu1 }
 0x10a   : > { %v472_v6 = vmul.f32 %v1034_v48, %v363_v4  ;;  %v480_v7 = vmul.f32 %v1034_v48, %v403_v5 }
 0x10c   : > { %v488_v8 = vadd.f32 %v473_v2, %v472_v6  ;;  %v516_v9 = vadd.f32 %v481_v3, %v480_v7  ;;  %v733_v10 = vpop.f32.mrb[2].mxu0  ;;  %v745_v11 = vpop.f32.mrb[2].mxu1 }
 0x10d   : > { %v475_v12 = vmul.f32 %v733_v10, %v1036_v49  ;;  %v483_v13 = vmul.f32 %v745_v11, %v1036_v49  ;;  %v373_v14 = vpop.f32.mrb[3].mxu0  ;;  %v413_v15 = vpop.f32.mrb[3].mxu1 }
 0x10e   : > { %v489_v16 = vrot.slane %v488_v8, 4  ;;  %v474_v17 = vmul.f32 %v1034_v48, %v373_v14  ;;  %v482_v18 = vmul.f32 %v1034_v48, %v413_v15  ;;  %v517_v29 = vrot.slane %v516_v9, 4 }
 0x110   : > { %v490_v19 = vadd.f32 %v489_v16, %v488_v8  ;;  %v495_v20 = vadd.f32 %v475_v12, %v474_v17  ;;  %v523_v21 = vadd.f32 %v483_v13, %v482_v18  ;;  %v736_v22 = vpop.f32.mrb[4].mxu0  ;;  %v748_v23 = vpop.f32.mrb[4].mxu1  ;;  %v518_v44 = vadd.f32 %v517_v29, %v516_v9 }
 0x111   : > { %v477_v24 = vmul.f32 %v736_v22, %v1036_v49  ;;  %v485_v25 = vmul.f32 %v748_v23, %v1036_v49  ;;  %v383_v26 = vpop.f32.mrb[5].mxu0  ;;  %v423_v27 = vpop.f32.mrb[5].mxu1 }
 0x112   : > { %v491_v28 = vrot.slane %v490_v19, 2  ;;  %v496_v30 = vrot.slane %v495_v20, 4  ;;  %v524_v31 = vrot.slane %v523_v21, 4  ;;  %v476_v32 = vmul.f32 %v1034_v48, %v383_v26 }
 0x113   : > { %v484_v33 = vmul.f32 %v1034_v48, %v423_v27  ;;  %v519_v59 = vrot.slane %v518_v44, 2 }
 0x114   : > { %v492_v34 = vadd.f32 %v491_v28, %v490_v19  ;;  %v497_v35 = vadd.f32 %v496_v30, %v495_v20  ;;  %v739_v36 = vpop.f32.mrb[6].mxu0  ;;  %v751_v37 = vpop.f32.mrb[6].mxu1  ;;  %v502_v38 = vadd.f32 %v477_v24, %v476_v32  ;;  %v525_v46 = vadd.f32 %v524_v31, %v523_v21 }
 0x115   : > { %v530_v39 = vadd.f32 %v485_v25, %v484_v33  ;;  %v479_v40 = vmul.f32 %v739_v36, %v1036_v49  ;;  %v487_v41 = vmul.f32 %v751_v37, %v1036_v49  ;;  %v393_v42 = vpop.f32.mrb[7].mxu0  ;;  %v433_v43 = vpop.f32.mrb[7].mxu1  ;;  %v520_v5 = vadd.f32 %v519_v59, %v518_v44 }
 0x116   : > { %v498_v45 = vrot.slane %v497_v35, 2  ;;  %v503_v47 = vrot.slane %v502_v38, 4  ;;  %v478_v51 = vmul.f32 %v1034_v48, %v393_v42  ;;  %v486_v52 = vmul.f32 %v1034_v48, %v433_v43 }
 0x117   : > { %v531_v50 = vrot.slane %v530_v39, 4  ;;  %v493_v53 = vrot.slane %v492_v34, 1  ;;  %v526_v60 = vrot.slane %v525_v46, 2  ;;  %v521_v15 = vrot.slane %v520_v5, 1 }
 0x118   : > { %v499_v54 = vadd.f32 %v498_v45, %v497_v35  ;;  %v504_v55 = vadd.f32 %v503_v47, %v502_v38  ;;  %v509_v57 = vadd.f32 %v479_v40, %v478_v51  ;;  %v537_v58 = vadd.f32 %v487_v41, %v486_v52 }
 0x119   : > { %v532_v56 = vadd.f32 %v531_v50, %v530_v39  ;;  %v494_v0 = vadd.f32 %v493_v53, %v492_v34  ;;  %v527_v7 = vadd.f32 %v526_v60, %v525_v46  ;;  %v522_v22 = vadd.f32 %v521_v15, %v520_v5 }
 0x11a   : > { %v500_v49 = vrot.slane %v499_v54, 1  ;;  %v505_v61 = vrot.slane %v504_v55, 2  ;;  %v510_v62 = vrot.slane %v509_v57, 4  ;;  %v538_v63 = vrot.slane %v537_v58, 4 }
 0x11b   : > { %v533_v2 = vrot.slane %v532_v56, 2  ;;  %v528_v16 = vrot.slane %v527_v7, 1 }
 0x11c   : > { %v501_v1 = vadd.f32 %v500_v49, %v499_v54  ;;  %v506_v3 = vadd.f32 %v505_v61, %v504_v55  ;;  %v511_v48 = vadd.f32 %v510_v62, %v509_v57  ;;  %v539_v4 = vadd.f32 %v538_v63, %v537_v58 }
 0x11d   : > { %v534_v11 = vadd.f32 %v533_v2, %v532_v56  ;;  %v529_v23 = vadd.f32 %v528_v16, %v527_v7 }
 0x11e   : > { %v553_v6 = vsel %vm552_vm9, %v501_v1, %v494_v0  ;;  %v507_v8 = vrot.slane %v506_v3, 1  ;;  %v512_v9 = vrot.slane %v511_v48, 2  ;;  %v540_v10 = vrot.slane %v539_v4, 2 }
 0x11f   : > { %v535_v19 = vrot.slane %v534_v11, 1 }
 0x120   : > { %v508_v12 = vadd.f32 %v507_v8, %v506_v3  ;;  %v513_v13 = vadd.f32 %v512_v9, %v511_v48  ;;  %v541_v14 = vadd.f32 %v540_v10, %v539_v4 }
 0x121   : > { %v536_v25 = vadd.f32 %v535_v19, %v534_v11 }
 0x122   : > { %v555_v17 = vsel %vm554_vm10, %v508_v12, %v553_v6  ;;  %v514_v18 = vrot.slane %v513_v13, 1  ;;  %v542_v21 = vrot.slane %v541_v14, 1 }
 0x124   : > { %v515_v20 = vadd.f32 %v514_v18, %v513_v13  ;;  %v543_v27 = vadd.f32 %v542_v21, %v541_v14 }
 0x126   : > { %v557_v24 = vsel %vm556_vm11, %v515_v20, %v555_v17 }
 0x127   : > { %v559_v26 = vsel %vm558_vm12, %v522_v22, %v557_v24 }
 0x128   : > { %v561_v28 = vsel %vm560_vm13, %v529_v23, %v559_v26 }
 0x129   : > { %v563_v29 = vsel %vm562_vm14, %v536_v25, %v561_v28 }
 0x12a   : > { %v565_v30 = vsel %vm564_vm15, %v543_v27, %v563_v29 }
 0x12b   : > { %567 = vst [vmem:[%s173_s13] sm:$0xff] %v565_v30 }
 0x12c   : > { %847 = shalt.err (!%p844_p7)
}
 0x12d   : > { %s848_s18 = scalar_lea.hbm %s1093_s4, 128  ;;  %s852_s25 = scalar_lea.hbm %s1150_s2, 512 }
 0x12e   : > { %p849_p9 = scmp.ne.s32.totalorder %s1093_s4, %s848_s18  ;;  %p853_p12 = scmp.lt.u32.totalorder %s1093_s4, %s1150_s2 }
 0x12f   : > { %p854_p13 = scmp.lt.u32.totalorder %s852_s25, %s848_s18  ;;  %p856_p1 = scmp.lt.u32.totalorder %s848_s18, %s1093_s4 }
 0x130   : > { %p850_p10 = pnand %p849_p9, %p998_p3 }
 0x131   : > { %p855_p0 = por %p854_p13, %p853_p12 }
 0x132   : > { %p851_p11 = pneg %p850_p10 }
 0x133   : > { %p857_p2 = por %p856_p1, %p855_p0 }
 0x135   : > { %p858_p4 = pnand %p857_p2, %p851_p11 }
 0x137   : > { %861 = shalt.err (!%p858_p4)
}
 0x138   : > { %762 = dma.vmem_to_hbm [thread:$0]  (%p998_p3), %s1095_s30, 128, %s1093_s4, %s569_s5  }
 0x139 PF: > { %p768_p5 = scmp.ge.s32.totalorder %s928_s16, 2  ;;  %s596_s29 = sand.u32 1, %s900_s9  }
 0x13a   : > { %s597_s13 = scalar_lea.sflag [#allocation3], %s596_s29 }
 0x13b   : > { %p765_p6 = pnand %p768_p5, %p1007_p8 }
 0x13d   : > { %895 = dma.done.wait (!%p765_p6), %s597_s13, 128  }
 0x13e   : > { %897 = vsyncadd (!%p765_p6), %s597_s13, 4294967168  ;;  %s15_s16 = sadd.s32 1, %s928_s16   ;;  %s1153_s9 = smov %s904_s10 }
 0x13f   : > { %p12_p7 = scmp.ge.s32.totalorder %s15_s16, 6   ;;  %s1154_s10 = smov %s908_s11 }
 0x140   : > { %s1155_s11 = smov %s1016_s27  ;;  %s1156_s12 = smov %s920_s14 }
 0x141   : > { %s1157_s13 = smov %s924_s15  ;;  %s1158_s14 = smov %s1161_s19 }
 0x142   : > { %s1159_s15 = smov %s1165_s20  ;;  %14 = sbr.rel (!%p12_p7) target bundleno = 5 (0x5), region = 66 }
 0x149   :  { %602 = vsyncpa [#allocation3], 1 }
 0x14a   :  { %604 = vsyncpa [#allocation3 + $0x1], 1 }

</bundles_post_ra>
